<compile_context>
chip_gen: v7x
topology: tpu7x:2x2x1
jax: 0.10.0
libtpu: 0.0.40
codegen_flags: <defaults>
</compile_context>

<pallas_src>
import jax
import jax.numpy as jnp
from jax import lax
from jax.experimental import pallas as pl
from jax.experimental.pallas import tpu as pltpu  # noqa: F401  (TPU backend / params)

# ----------------------- model dimensions (small, synthetic) ----------------
B, C, H, W = 2, 4, 16, 16          # NCHW input
FEATS = C * H * W                  # 1024
HIDDEN = 32                        # hooked-layer width
NUM_CLASSES = 10
PAD = 128                          # lane-dense slab width (TPU lane count)
OUT_W = 2 * PAD                    # [activation slab | logits slab]


# ----------------------------- Pallas kernel --------------------------------
def inverted_model_kernel(x_ref, w1t_ref, b1_ref, wc_ref, bc_ref, out_ref):
    """Fused MLP forward producing [hooked activation | logits] in one slab.

    x_ref:    [B, FEATS]        f32 flattened input
    w1t_ref:  [HIDDEN, FEATS]   bf16, W1 stored transposed (FEATS on lanes)
    b1_ref:   [1, HIDDEN]       f32
    wc_ref:   [HIDDEN, 2*PAD]   f32, [ I_pad | W2_pad ]
    bc_ref:   [1, 2*PAD]        f32, [ 0     | b2_pad ]
    out_ref:  [B, 2*PAD]        cols [0, HIDDEN)          -> hooked activation
                                cols [PAD, PAD+NUM_CLASSES) -> logits
    """
    # MXU operands in bf16, f32 accumulation.  Contract the lane dim of both
    # operands (W1 stored transposed) -> zero lane padding in VMEM.
    x_bf = x_ref[...].astype(jnp.bfloat16)
    h = lax.dot_general(
        x_bf, w1t_ref[...],
        dimension_numbers=(((1,), (1,)), ((), ())),
        preferred_element_type=jnp.float32)                    # [B, HIDDEN] f32
    h = jnp.maximum(h + b1_ref[...], 0.0)                      # hooked activation

    # Single f32 MXU matmul producing both slabs:
    #   h @ [I_pad | W2_pad] + [0 | b2_pad]  ->  [activation | logits]
    # Identity columns reproduce h exactly; logits half matches h @ W2 + b2.
    y = jnp.dot(h, wc_ref[...], preferred_element_type=jnp.float32)
    out_ref[...] = (y + bc_ref[...]).astype(out_ref.dtype)     # one 256-lane store


# ------------------------------ wrapper --------------------------------------
def inverted_model_forward(x_nchw, w1, b1, w2, b2):
    """Returns (logits, activation) like InvertedModel.forward."""
    bsz = x_nchw.shape[0]
    # Layout plumbing (plain JAX): flatten NCHW like torch .view(B, -1),
    # transpose+cast W1 so FEATS is the lane axis, pack [I_pad | W2_pad].
    x_flat = x_nchw.reshape(bsz, -1).astype(jnp.float32)
    w1_t = jnp.asarray(w1, jnp.float32).T.astype(jnp.bfloat16)      # [HIDDEN, FEATS]
    b1_f = jnp.asarray(b1, jnp.float32).reshape(1, HIDDEN)

    eye_pad = jnp.zeros((HIDDEN, PAD), jnp.float32).at[:, :HIDDEN].set(
        jnp.eye(HIDDEN, dtype=jnp.float32))
    w2_pad = jnp.zeros((HIDDEN, PAD), jnp.float32).at[:, :NUM_CLASSES].set(
        jnp.asarray(w2, jnp.float32))
    wc = jnp.concatenate([eye_pad, w2_pad], axis=1)                 # [HIDDEN, 2*PAD]
    bc = jnp.zeros((1, OUT_W), jnp.float32).at[0, PAD:PAD + NUM_CLASSES].set(
        jnp.asarray(b2, jnp.float32).reshape(-1))

    flops = (2 * bsz * FEATS * HIDDEN          # x @ W1
             + 2 * bsz * HIDDEN * OUT_W        # h @ Wc
             + 2 * bsz * HIDDEN                # +b1, ReLU
             + bsz * OUT_W)                    # +bc
    bytes_accessed = (x_flat.size * 4 + w1_t.size * 2 + b1_f.size * 4
                      + wc.size * 4 + bc.size * 4 + bsz * OUT_W * 4)

    grid_spec = pl.GridSpec(
        # Single grid step: per-step overhead (~0.35 us) exceeds the entire
        # W1 DMA, so tiling this tiny problem would be pure overhead.
        grid=(1,),
        in_specs=[
            pl.BlockSpec((bsz, FEATS), lambda i: (0, 0)),
            pl.BlockSpec((HIDDEN, FEATS), lambda i: (0, 0)),
            pl.BlockSpec((1, HIDDEN), lambda i: (0, 0)),
            pl.BlockSpec((HIDDEN, OUT_W), lambda i: (0, 0)),
            pl.BlockSpec((1, OUT_W), lambda i: (0, 0)),
        ],
        out_specs=pl.BlockSpec((bsz, OUT_W), lambda i: (0, 0)),
    )

    out = pl.pallas_call(
        inverted_model_kernel,
        grid_spec=grid_spec,
        out_shape=jax.ShapeDtypeStruct((bsz, OUT_W), jnp.float32),
        cost_estimate=pl.CostEstimate(flops=flops, transcendentals=0,
                                      bytes_accessed=bytes_accessed),
    )(x_flat, w1_t, b1_f, wc, bc)

    # Slice the two lane-dense slabs back to the module's true widths.
    activation = out[:, :HIDDEN]
    logits = out[:, PAD:PAD + NUM_CLASSES]
    return logits, activation


# ------------------------------ main -----------------------------------------
if __name__ == "__main__":
    key = jax.random.PRNGKey(0)
    kx, k1, k2, k3, k4 = jax.random.split(key, 5)

    # deterministic synthetic parameters (shapes follow the module dims above)
    x = jax.random.normal(kx, (B, C, H, W), dtype=jnp.float32)
    w1 = jax.random.normal(k1, (FEATS, HIDDEN), dtype=jnp.float32) * 0.02
    b1 = jax.random.normal(k2, (1, HIDDEN), dtype=jnp.float32) * 0.01
    w2 = jax.random.normal(k3, (HIDDEN, NUM_CLASSES), dtype=jnp.float32) * 0.02
    b2 = jax.random.normal(k4, (1, NUM_CLASSES), dtype=jnp.float32) * 0.01

    logits, activation = inverted_model_forward(x, w1, b1, w2, b2)
    jax.block_until_ready((logits, activation))

    x_flat = x.reshape(B, -1)

    # Tight check against a reference using the same bf16-W1 / f32-accumulate math.
    h_bf = jnp.maximum(
        jnp.dot(x_flat.astype(jnp.bfloat16), w1.astype(jnp.bfloat16),
                preferred_element_type=jnp.float32) + b1, 0.0)
    logits_bf = h_bf @ w2 + b2
    assert jnp.allclose(activation, h_bf, atol=1e-3, rtol=1e-3)
    assert jnp.allclose(logits, logits_bf, atol=1e-3, rtol=1e-3)

    # Loose check against the full-f32 reference (PyTorch-equivalent semantics).
    h_f32 = jnp.maximum(x_flat @ w1 + b1, 0.0)
    logits_f32 = h_f32 @ w2 + b2
    assert jnp.allclose(activation, h_f32, atol=5e-2, rtol=5e-2)
    assert jnp.allclose(logits, logits_f32, atol=5e-2, rtol=5e-2)

    assert logits.shape == (B, NUM_CLASSES) and activation.shape == (B, HIDDEN)
    print("KERNEL_OK")
</pallas_src>

<mosaic_0001>
module attributes {stable_mosaic.version = 11 : i64} {
  func.func @inverted_model_kernel(%arg0: i32, %arg1: memref<2x1024xf32, #tpu.memory_space<vmem>>, %arg2: memref<32x1024xbf16, #tpu.memory_space<vmem>>, %arg3: memref<1x32xf32, #tpu.memory_space<vmem>>, %arg4: memref<32x256xf32, #tpu.memory_space<vmem>>, %arg5: memref<1x256xf32, #tpu.memory_space<vmem>>, %arg6: memref<2x256xf32, #tpu.memory_space<vmem>>) attributes {dimension_semantics = [#tpu.dimension_semantics<arbitrary>], iteration_bounds = array<i64: 1>, scalar_prefetch = 0 : i64, scratch_operands = 0 : i64, tpu.core_type = #tpu.core_type<tc>, window_params = [{pipeline_mode = #tpu.pipeline_mode<synchronous>, transform_indices = @transform_0, window_bounds = array<i64: 2, 1024>}, {pipeline_mode = #tpu.pipeline_mode<synchronous>, transform_indices = @transform_1, window_bounds = array<i64: 32, 1024>}, {pipeline_mode = #tpu.pipeline_mode<synchronous>, transform_indices = @transform_2, window_bounds = array<i64: 1, 32>}, {pipeline_mode = #tpu.pipeline_mode<synchronous>, transform_indices = @transform_3, window_bounds = array<i64: 32, 256>}, {pipeline_mode = #tpu.pipeline_mode<synchronous>, transform_indices = @transform_4, window_bounds = array<i64: 1, 256>}, {pipeline_mode = #tpu.pipeline_mode<synchronous>, transform_indices = @transform_5, window_bounds = array<i64: 2, 256>}]} {
    %c0 = arith.constant 0 : index
    %c0_0 = arith.constant 0 : index
    %0 = vector.load %arg1[%c0, %c0_0] : memref<2x1024xf32, #tpu.memory_space<vmem>>, vector<2x1024xf32>
    %1 = arith.truncf %0 : vector<2x1024xf32> to vector<2x1024xbf16>
    %c0_1 = arith.constant 0 : index
    %c0_2 = arith.constant 0 : index
    %2 = vector.load %arg2[%c0_1, %c0_2] : memref<32x1024xbf16, #tpu.memory_space<vmem>>, vector<32x1024xbf16>
    %cst = arith.constant dense<0.000000e+00> : vector<2x32xf32>
    %3 = tpu.matmul %1, %2, %cst {dimension_numbers = #tpu.dot_dimension_numbers<[1], [1], [0], [0], [0, 0, 1, 0], [], []>} : vector<2x1024xbf16>, vector<32x1024xbf16>, vector<2x32xf32> -> vector<2x32xf32>
    %c0_3 = arith.constant 0 : index
    %c0_4 = arith.constant 0 : index
    %4 = vector.load %arg3[%c0_3, %c0_4] : memref<1x32xf32, #tpu.memory_space<vmem>>, vector<1x32xf32>
    %5 = vector.broadcast %4 : vector<1x32xf32> to vector<2x32xf32>
    %6 = arith.addf %3, %5 : vector<2x32xf32>
    %cst_5 = arith.constant 0.000000e+00 : f32
    %7 = vector.broadcast %cst_5 : f32 to vector<2x32xf32>
    %8 = arith.maximumf %6, %7 : vector<2x32xf32>
    %c0_6 = arith.constant 0 : index
    %c0_7 = arith.constant 0 : index
    %9 = vector.load %arg4[%c0_6, %c0_7] : memref<32x256xf32, #tpu.memory_space<vmem>>, vector<32x256xf32>
    %cst_8 = arith.constant dense<0.000000e+00> : vector<2x256xf32>
    %10 = tpu.matmul %8, %9, %cst_8 {dimension_numbers = #tpu.dot_dimension_numbers<[1], [0], [0], [1], [0, 0, 1, 1], [], []>} : vector<2x32xf32>, vector<32x256xf32>, vector<2x256xf32> -> vector<2x256xf32>
    %c0_9 = arith.constant 0 : index
    %c0_10 = arith.constant 0 : index
    %11 = vector.load %arg5[%c0_9, %c0_10] : memref<1x256xf32, #tpu.memory_space<vmem>>, vector<1x256xf32>
    %12 = vector.broadcast %11 : vector<1x256xf32> to vector<2x256xf32>
    %13 = arith.addf %10, %12 : vector<2x256xf32>
    %c0_11 = arith.constant 0 : index
    %c0_12 = arith.constant 0 : index
    %14 = vector.load %arg6[%c0_11, %c0_12] : memref<2x256xf32, #tpu.memory_space<vmem>>, vector<2x256xf32>
    tpu.vector_store %arg6[%c0_11, %c0_12], %13 {strides = array<i32>} : memref<2x256xf32, #tpu.memory_space<vmem>>, vector<2x256xf32>,
    return
  }
  func.func @transform_0(%arg0: i32) -> (i32, i32) {
    %c0_i32 = arith.constant 0 : i32
    %c0_i32_0 = arith.constant 0 : i32
    %c0_i32_1 = arith.constant 0 : i32
    return %c0_i32, %c0_i32_0 : i32, i32
  }
  func.func @transform_1(%arg0: i32) -> (i32, i32) {
    %c0_i32 = arith.constant 0 : i32
    %c0_i32_0 = arith.constant 0 : i32
    %c0_i32_1 = arith.constant 0 : i32
    return %c0_i32, %c0_i32_0 : i32, i32
  }
  func.func @transform_2(%arg0: i32) -> (i32, i32) {
    %c0_i32 = arith.constant 0 : i32
    %c0_i32_0 = arith.constant 0 : i32
    %c0_i32_1 = arith.constant 0 : i32
    return %c0_i32, %c0_i32_0 : i32, i32
  }
  func.func @transform_3(%arg0: i32) -> (i32, i32) {
    %c0_i32 = arith.constant 0 : i32
    %c0_i32_0 = arith.constant 0 : i32
    %c0_i32_1 = arith.constant 0 : i32
    return %c0_i32, %c0_i32_0 : i32, i32
  }
  func.func @transform_4(%arg0: i32) -> (i32, i32) {
    %c0_i32 = arith.constant 0 : i32
    %c0_i32_0 = arith.constant 0 : i32
    %c0_i32_1 = arith.constant 0 : i32
    return %c0_i32, %c0_i32_0 : i32, i32
  }
  func.func @transform_5(%arg0: i32) -> (i32, i32) {
    %c0_i32 = arith.constant 0 : i32
    %c0_i32_0 = arith.constant 0 : i32
    %c0_i32_1 = arith.constant 0 : i32
    return %c0_i32, %c0_i32_0 : i32, i32
  }
}

</mosaic_0001>

<bundles_post_ra>
// kernel: tpu_custom_call.1
= control target key start
LH: loop header
LB: loop body
LE: loop exit
PB: predicated region body
PF: predicated region fallthrough
CT: control target
= control target key end

     0   :  { %10 = vsyncpa [#allocation3], 0  ;;  %s744_s0 = inlined_call_operand.hbm [shape: f32[2,1024], index: 0, kind: input, shape index: {}]   ;;  %s745_s1 = inlined_call_operand.hbm [shape: bf16[32,1024], index: 1, kind: input, shape index: {}]   ;;  %s746_s2 = inlined_call_operand.vmem [shape: f32[1,32], index: 2, kind: input, shape index: {}]   ;;  %s747_s3 = inlined_call_operand.hbm [shape: f32[32,256], index: 3, kind: input, shape index: {}]   ;;  %s748_s4 = inlined_call_operand.vmem [shape: f32[1,256], index: 4, kind: input, shape index: {}]   ;;  %s749_s5 = inlined_call_operand.hbm [shape: f32[2,256], index: 5, kind: output, shape index: {}]  }
   0x1   :  { %11 = vsyncpa [#allocation6], 0 }
   0x2   :  { %12 = vsyncpa [#allocation4], 0  ;;  %s645_s18 = smov [#allocation5]   ;;  %s551_s22 = scalar_lea.hbm %s745_s1, 2048 }
   0x3   :  { %s28_s19 = sshll.u32 %s645_s18, 4  ;;  %p552_p0 = scmp.ne.s32.totalorder %s745_s1, %s551_s22  ;;  %s29_s19 = int_to_ptr.vmem [resolvable:$true] %s28_s19 }
   0x4   :  { %p555_p1 = scmp.lt.u32.totalorder %s551_s22, %s745_s1 }
   0x6   :  { %p557_p2 = pnand %p555_p1, %p552_p0 }
   0x8   :  { %560 = shalt.err (!%p557_p2)
}
   0x9   :  { %s561_s27 = scalar_lea.vmem %s29_s19, 2048  ;;  %p566_p4 = scmp.lt.s32.totalorder %s29_s19, %s29_s19 }
   0xa   :  { %p562_p3 = scmp.ne.s32.totalorder %s29_s19, %s561_s27  ;;  %p567_p5 = scmp.lt.s32.totalorder %s561_s27, %s561_s27 }
   0xc   :  { %p568_p6 = por %p567_p5, %p566_p4 }
   0xe   :  { %p569_p7 = pnand %p568_p6, %p562_p3 }
  0x10   :  { %572 = shalt.err (!%p569_p7)
}
  0x11   :  { %s646_s28 = smov 512   ;;  %s647_s29 = smov 32  }
  0x12   :  { %34 = dma.hbm_to_vmem [thread:$0]  %s745_s1, 2048, %s29_s19, [#allocation6], %s646_s28, %s646_s28, %s647_s29  }
  0x13   :  { %s648_s7 = smov [#allocation2]   ;;  %s649_s9 = smov [#allocation7]  }
  0x14   :  { %s19_s8 = sshll.u32 %s648_s7, 4  ;;  %s42_s10 = sshll.u32 %s649_s9, 4  ;;  %s20_s8 = int_to_ptr.vmem [resolvable:$true] %s19_s8  ;;  %s43_s10 = int_to_ptr.vmem [resolvable:$true] %s42_s10 }
  0x15   :  { %s573_s13 = scalar_lea.hbm %s744_s0, 256 }
  0x16   :  { %p574_p8 = scmp.ne.s32.totalorder %s744_s0, %s573_s13  ;;  %p577_p9 = scmp.lt.u32.totalorder %s573_s13, %s744_s0 }
  0x18   :  { %p579_p10 = pnand %p577_p9, %p574_p8 }
  0x1a   :  { %582 = shalt.err (!%p579_p10)
}
  0x1b   :  { %s583_s1 = scalar_lea.vmem %s20_s8, 256  ;;  %p588_p12 = scmp.lt.s32.totalorder %s20_s8, %s20_s8 }
  0x1c   :  { %p584_p11 = scmp.ne.s32.totalorder %s20_s8, %s583_s1  ;;  %p589_p13 = scmp.lt.s32.totalorder %s583_s1, %s583_s1 }
  0x1e   :  { %p590_p0 = por %p589_p13, %p588_p12 }
  0x20   :  { %p591_p1 = pnand %p590_p0, %p584_p11 }
  0x22   :  { %594 = shalt.err (!%p591_p1)
}
  0x23   :  { %22 = dma.hbm_to_vmem [thread:$0]  %s744_s0, 256, %s20_s8, [#allocation3]  }
  0x24   :  { %s595_s22 = scalar_lea.hbm %s747_s3, 1024 }
  0x25   :  { %p596_p2 = scmp.ne.s32.totalorder %s747_s3, %s595_s22  ;;  %p599_p3 = scmp.lt.u32.totalorder %s595_s22, %s747_s3 }
  0x27   :  { %p601_p4 = pnand %p599_p3, %p596_p2 }
  0x29   :  { %604 = shalt.err (!%p601_p4)
}
  0x2a   :  { %s605_s27 = scalar_lea.vmem %s43_s10, 1024  ;;  %p610_p6 = scmp.lt.s32.totalorder %s43_s10, %s43_s10 }
  0x2b   :  { %p606_p5 = scmp.ne.s32.totalorder %s43_s10, %s605_s27  ;;  %p611_p7 = scmp.lt.s32.totalorder %s605_s27, %s605_s27 }
  0x2d   :  { %p612_p8 = por %p611_p7, %p610_p6 }
  0x2f   :  { %p613_p9 = pnand %p612_p8, %p606_p5 }
  0x31   :  { %616 = shalt.err (!%p613_p9)
}
  0x32   :  { %s650_s0 = smov 256   ;;  %s651_s28 = smov 16  }
  0x33   :  { %48 = dma.hbm_to_vmem [thread:$0]  %s747_s3, 1024, %s43_s10, [#allocation6], %s650_s0, %s650_s0, %s651_s28  }
  0x34   :  { %639 = dma.done.wait [#allocation3], 256  }
  0x35   :  { %640 = vsyncadd [#allocation3], 4294967040 }
  0x36   :  { %641 = dma.done.wait [#allocation6], 3072  }
  0x37   :  { %642 = vsyncadd [#allocation6], 4294964224  ;;  %v69_v0 = vlaneseq  ;;  %v652_v1 = vmov 1983009808   ;;  %v115_v6 = vld [vmem:[#allocation5] sm:$0xff]  ;;  %v117_v8 = vld [vmem:[#allocation5 + $0x10] sm:$0xff] }
  0x38   :  { %v67_v2 = vunpack.c.l.s4 %v652_v1  ;;  %v119_v7 = vld [vmem:[#allocation5 + $0x20] sm:$0xff]  ;;  %v121_v10 = vld [vmem:[#allocation5 + $0x30] sm:$0xff]  ;;  %v62_v22 = vld [vmem:[#allocation2 + $0x8] sm:$0xff]  ;;  %vm399_vm0 = vcmask 261120  }
  0x39   :  { %v721_v3 = vshrl.u32 %v69_v0, 7  ;;  %v504_v9 = vcombine.high %v115_v6, %v119_v7  ;;  %v503_v11 = vcombine.low %v115_v6, %v119_v7  ;;  %v123_v12 = vld [vmem:[#allocation5 + $0x40] sm:$0xff]  ;;  %v508_v14 = vcombine.high %v117_v8, %v121_v10  ;;  %v125_v17 = vld [vmem:[#allocation5 + $0x50] sm:$0xff]  ;;  %v116_v26 = vld [vmem:[#allocation5 + $0x8] sm:$0xff] }
  0x3a   :  { %v68_v4 = vunpack.c.0.s8 %v67_v2  ;;  %v127_v13 = vld [vmem:[#allocation5 + $0x60] sm:$0xff]  ;;  %v507_v15 = vcombine.low %v117_v8, %v121_v10  ;;  %v129_v18 = vld [vmem:[#allocation5 + $0x70] sm:$0xff]  ;;  %v120_v27 = vld [vmem:[#allocation5 + $0x28] sm:$0xff]  ;;  %v82_v29 = vcombine.high %v62_v22, %v62_v22  ;;  %v653_v7 = vmov 0.0  }
  0x3b   :  { %v512_v16 = vcombine.high %v123_v12, %v127_v13  ;;  %v61_v19 = vld [vmem:[#allocation2] sm:$0xff]  ;;  %218 = vmatprep.subr.bf16.mxu1 %v504_v9  ;;  %v516_v20 = vcombine.high %v125_v17, %v129_v18  ;;  %298 = vmatprep.subr.bf16.mxu0 %v508_v14  ;;  %v118_v31 = vld [vmem:[#allocation5 + $0x18] sm:$0xff]  ;;  %v511_v33 = vcombine.low %v123_v12, %v127_v13  ;;  %v124_v40 = vld [vmem:[#allocation5 + $0x48] sm:$0xff] }
  0x3c   :  { %v71_v5 = vsub.s32 %v68_v4, %v721_v3  ;;  %219 = vmatpush1.bf16.xpose.msra.mxu1 %v503_v11  ;;  %299 = vmatpush1.bf16.xpose.msra.mxu0 %v507_v15  ;;  %v65_v25 = vcombine.high %v61_v19, %v61_v19  ;;  %v122_v32 = vld [vmem:[#allocation5 + $0x38] sm:$0xff]  ;;  %v515_v34 = vcombine.low %v125_v17, %v129_v18  ;;  %v128_v41 = vld [vmem:[#allocation5 + $0x68] sm:$0xff]  ;;  %v379_v59 = vld [vmem:[#allocation7] sm:$0xff] }
  0x3d   :  { %220 = vmatprep.subr.bf16.mxu1 %v512_v16  ;;  %300 = vmatprep.subr.bf16.mxu0 %v516_v20  ;;  %v506_v35 = vcombine.high %v116_v26, %v120_v27  ;;  %v510_v37 = vcombine.high %v118_v31, %v122_v32  ;;  %v126_v44 = vld [vmem:[#allocation5 + $0x58] sm:$0xff]  ;;  %v505_v47 = vcombine.low %v116_v26, %v120_v27  ;;  %v380_v54 = vld [vmem:[#allocation7 + $0x8] sm:$0xff]  ;;  %v381_v60 = vld [vmem:[#allocation7 + $0x10] sm:$0xff]  ;;  %v391_v20 = vsub.s32 0, %v721_v3 }
  0x3e   :  { %v72_v21 = vrot.slane %v61_v19, %v71_v5  ;;  %v89_v24 = vrot.slane %v62_v22, %v71_v5  ;;  %v79_v38 = vrot.slane %v65_v25, %v71_v5  ;;  %v96_v39 = vrot.slane %v82_v29, %v71_v5  ;;  %v130_v45 = vld [vmem:[#allocation5 + $0x78] sm:$0xff]  ;;  %v384_v0 = vld [vmem:[#allocation7 + $0x28] sm:$0xff]  ;;  %v383_v4 = vld [vmem:[#allocation7 + $0x20] sm:$0xff] }
  0x3f   :  { %v509_v49 = vcombine.low %v118_v31, %v122_v32  ;;  %v514_v50 = vcombine.high %v124_v40, %v128_v41  ;;  %v518_v51 = vcombine.high %v126_v44, %v130_v45  ;;  %v382_v55 = vld [vmem:[#allocation7 + $0x18] sm:$0xff]  ;;  %v513_v56 = vcombine.low %v124_v40, %v128_v41  ;;  %v385_v5 = vld [vmem:[#allocation7 + $0x30] sm:$0xff] }
  0x40   :  { %v80_v23 = vcombine.high %v72_v21, %v72_v21  ;;  %v97_v30 = vcombine.high %v89_v24, %v89_v24  ;;  %v81_v42 = vcombine.high %v79_v38, %v79_v38  ;;  %v107_v43 = vpack.c.bf16 %v72_v21, %v72_v21  ;;  %v386_v1 = vld [vmem:[#allocation7 + $0x38] sm:$0xff]  ;;  %v502_v8 = vld [vmem:[%s746_s2] ss:$0 sm:$0xff]  ;;  %s654_s2 = smov [#allocation8]  }
  0x41   :  { %v98_v46 = vcombine.high %v96_v39, %v96_v39  ;;  %v111_v48 = vpack.c.bf16 %v89_v24, %v89_v24  ;;  %v517_v57 = vcombine.low %v126_v44, %v130_v45  ;;  %v521_v58 = vpack.c.bf16 %v382_v55, %v380_v54  ;;  %v387_v21 = vld [vmem:[%s748_s4] sm:$0x3]  ;;  %s492_s9 = sshll.u32 %s654_s2, 4  ;;  %s493_s9 = int_to_ptr.vmem [resolvable:$true] %s492_s9 }
  0x42   :  { %v108_v28 = vpack.c.bf16 %v80_v23, %v80_v23  ;;  %v112_v36 = vpack.c.bf16 %v97_v30, %v97_v30  ;;  %v110_v52 = vpack.c.bf16 %v81_v42, %v81_v42  ;;  %v109_v61 = vpack.c.bf16 %v79_v38, %v79_v38  ;;  %s617_s10 = scalar_lea.vmem %s493_s9, 64  ;;  %p622_p11 = scmp.lt.s32.totalorder %s493_s9, %s493_s9 }
  0x43   :  { %v114_v53 = vpack.c.bf16 %v98_v46, %v98_v46  ;;  %v113_v62 = vpack.c.bf16 %v96_v39, %v96_v39  ;;  %v523_v63 = vpack.c.bf16 %v381_v60, %v379_v59  ;;  %v525_v2 = vpack.c.bf16 %v386_v1, %v384_v0  ;;  %p618_p10 = scmp.ne.s32.totalorder %s493_s9, %s617_s10  ;;  %p623_p12 = scmp.lt.s32.totalorder %s617_s10, %s617_s10 }
  0x44   :  { %250 = vmatprep.mubr.bf16.mxu1 %v108_v28  ;;  %330 = vmatprep.mubr.bf16.mxu0 %v112_v36  ;;  %v527_v6 = vpack.c.bf16 %v385_v5, %v383_v4  ;;  %v395_v22 = vsub.s32 1, %v721_v3  ;;  %v392_v23 = vrot.slane %v387_v21, %v391_v20 }
  0x45   :  { %221 = vmatpush1.bf16.xpose.msra.mxu1 %v511_v33  ;;  %301 = vmatpush1.bf16.xpose.msra.mxu0 %v515_v34  ;;  %p624_p13 = por %p623_p12, %p622_p11 }
  0x46   :  { %258 = vmatprep.subr.bf16.mxu1 %v506_v35  ;;  %338 = vmatprep.subr.bf16.mxu0 %v510_v37  ;;  %v396_v24 = vrot.slane %v387_v21, %v395_v22 }
  0x47   :  { %p625_p0 = pnand %p624_p13, %p618_p10 }
  0x4c   :  { %251 = vmatmul.mubr.bf16.vlgmr.msra.gmra.mrb[0].mxu1 %v107_v43  ;;  %331 = vmatmul.mubr.bf16.vlgmr.msra.gmra.mrb[0].mxu0 %v111_v48 }
  0x4d   :  { %259 = vmatpush1.bf16.xpose.msra.mxu1 %v505_v47  ;;  %339 = vmatpush1.bf16.xpose.msra.mxu0 %v509_v49 }
  0x4e   :  { %260 = vmatprep.subr.bf16.mxu1 %v514_v50  ;;  %340 = vmatprep.subr.bf16.mxu0 %v518_v51 }
  0x4f   :  { %290 = vmatprep.mubr.bf16.mxu1 %v110_v52  ;;  %370 = vmatprep.mubr.bf16.mxu0 %v114_v53 }
  0x55   :  { %261 = vmatpush1.bf16.xpose.msra.mxu1 %v513_v56  ;;  %341 = vmatpush1.bf16.xpose.msra.mxu0 %v517_v57 }
  0x56   :  { %522 = vmatprep.subr.bf16.mxu1 %v521_v58 }
  0x5c   :  { %291 = vmatmul.mubr.bf16.vlgmr.msra.gmra.mrb[0].mxu1 %v109_v61  ;;  %371 = vmatmul.mubr.bf16.vlgmr.msra.gmra.mrb[0].mxu0 %v113_v62 }
  0x5d   :  { %524 = vmatpush1.bf16.msra.mxu1 %v523_v63  ;;  %467 = vmatprep.mubr.f32.mxu1 %v653_v7 }
  0x5e   :  { %526 = vmatprep.subr.bf16.mxu1 %v525_v2 }
  0x61   :  { %528 = vmatpush1.bf16.msra.mxu1 %v527_v6 }
 0x12f   :  { %v292_v9 = vpop.f32.mrb[0].mxu1  ;;  %v372_v11 = vpop.f32.mrb[0].mxu0 }
 0x130   :  { %v529_v10 = vadd.f32 %v502_v8, %v292_v9  ;;  %v294_v12 = vpop.f32.mrb[1].mxu1  ;;  %v374_v13 = vpop.f32.mrb[1].mxu0 }
 0x131   :  { %v295_v14 = vpop.f32.mrb[2].mxu1  ;;  %v375_v16 = vpop.f32.mrb[2].mxu0 }
 0x132   :  { %v530_v15 = vadd.f32 %v529_v10, %v372_v11  ;;  %v296_v17 = vpop.f32.mrb[3].mxu1  ;;  %v376_v18 = vpop.f32.mrb[3].mxu0 }
 0x134   :  { %v378_v19 = vmax.f32 %v530_v15, 0.0 }
 0x136   :  { %519 = vmatmul.mubr.msk.f32.vlgmr.msra.gmra.mrb[4].mxu1 %vm399_vm0, %v378_v19 }
 0x209   :  { %v469_v25 = vpop.f32.mrb[4].mxu1 }
 0x20a   :  { %v470_v26 = vadd.f32 %v469_v25, %v392_v23  ;;  %v471_v27 = vpop.f32.mrb[5].mxu1 }
 0x20b   :  { %v472_v28 = vadd.f32 %v471_v27, %v396_v24 }
 0x20d   :  { %v476_v29 = vcombine.low %v470_v26, %v472_v28 }
 0x20f   :  { %520 = vst.sshfl [vmem:[#allocation8] sm:$0x33 pattern:$0x76325410] %v476_v29 }
 0x210   :  { %628 = shalt.err (!%p625_p0)
}
 0x211   :  { %s629_s12 = scalar_lea.hbm %s749_s5, 64 }
 0x212   :  { %p630_p1 = scmp.ne.s32.totalorder %s749_s5, %s629_s12  ;;  %p633_p2 = scmp.lt.u32.totalorder %s629_s12, %s749_s5 }
 0x214   :  { %p635_p3 = pnand %p633_p2, %p630_p1 }
 0x216   :  { %638 = shalt.err (!%p635_p3)
}
 0x217   :  { %495 = dma.vmem_to_hbm [thread:$0]  %s493_s9, 64, %s749_s5, [#allocation4]  }
 0x218   :  { %643 = dma.done.wait [#allocation4], 64  }
 0x219   :  { %644 = vsyncadd [#allocation4], 4294967232 }
 0x21a   :  { %499 = vsyncpa [#allocation3], 1 }
 0x21b   :  { %500 = vsyncpa [#allocation6], 1 }
 0x21c   :  { %501 = vsyncpa [#allocation4], 1 }

</bundles_post_ra>
